<compile_context>
chip_gen: v5e
topology: v5e:2x2
jax: 0.10.0
libtpu: 0.0.40
codegen_flags: <defaults>
</compile_context>

<pallas_src>
import jax
import jax.numpy as jnp
import numpy as np
from jax.experimental import pallas as pl
from jax.experimental.pallas import tpu as pltpu


def _round_up(x, m):
    return ((x + m - 1) // m) * m


def _attn_general_kernel(v_ref, enc_ref, out_ref):
    """One batch block of Luong 'general' attention scores + softmax.

    v_ref  : (tB, H)     pre-projected decoder hidden state, v = hidden @ W
    enc_ref: (L, tB, H)  encoder-output block, native (L, B, H) layout
    out_ref: (tB, L)     attention weights (softmax over L)
    """
    v = v_ref[...].astype(jnp.float32)                   # (tB, H)
    enc = enc_ref[...].astype(jnp.float32)               # (L, tB, H)

    # score[l, b] = sum_h enc[l, b, h] * v[b, h]  -> VPU multiply + H reduce.
    # TODO(synk): if profiling shows the H lane-reduce saturating the XLU, route
    # the reduction through the MXU (reshape to (L*tB, H) @ ones(H, 1)); the MXU
    # has large slack in this HBM-bound kernel.
    scores = jnp.sum(enc * v[None, :, :], axis=2)         # (L, tB)

    # Tiny transpose so the softmax axis (L) is the lane axis and the store is
    # already in the (B, L) orientation the module returns.
    scores = scores.T                                      # (tB, L)

    m = jnp.max(scores, axis=1, keepdims=True)
    p = jnp.exp(scores - m)
    denom = jnp.sum(p, axis=1, keepdims=True)
    # Exact division: softmax rows must sum to 1 (approx reciprocal was ~1e-3 off).
    out_ref[...] = (p / denom).astype(out_ref.dtype)


def _vmem_capacity_bytes():
    """Per-core VMEM capacity; conservative fallback when the query is unavailable."""
    try:
        return int(pltpu.get_tpu_info().vmem_capacity_bytes)
    except Exception:
        return 64 << 20  # v7x is the smallest (64 MiB per TensorCore)


def _choose_block_b(B, L, H, itemsize, vmem_bytes):
    """Batch-tile size: as large as ~half of VMEM allows (double-buffered encoder
    stream, H lane-padded to 128), but small enough to keep >= 2 grid steps so
    both v7x TensorCores have work when the batch allows it."""
    lane_h = _round_up(H, 128)                        # VMEM lane padding of H
    row_bytes = L * lane_h * itemsize                 # one batch row of an enc block
    budget = vmem_bytes // 2                          # headroom for out / v / runtime
    fit = max(8, (budget // (2 * row_bytes) // 8) * 8)     # 2x: double-buffered input
    want = _round_up(max(1, -(-B // 2)), 8)           # >= 2 grid steps when B > 8
    # TODO(synk): for very long L (or huge H), where even block_b=8 overflows the
    # budget, add a second ("arbitrary", last) grid axis over L tiles with an
    # online-softmax accumulator instead of holding the full (L, block_b, H) slab.
    return int(min(fit, want))


def attn_general(hidden, encoder_outputs, weight, bias, *, block_b=None):
    """hidden: (1, B, H); encoder_outputs: (L, B, H); weight: (H, H) in PyTorch
    nn.Linear layout W[out, in]; bias: (H,).  Returns (B, 1, L) attention weights,
    matching Attn.forward with method='general'."""
    del bias  # hidden·bias is constant over L -> cancels exactly in the softmax.
    L, B, H = encoder_outputs.shape

    # Tiny projection done once in the wrapper (keeps the (H,H) weight out of VMEM):
    # Linear(x) = x @ W.T + b  =>  v[b, h_in] = sum_k hidden[b, k] * W[k, h_in].
    v = jnp.dot(hidden[0], weight,
                preferred_element_type=jnp.float32).astype(encoder_outputs.dtype)

    itemsize = jnp.dtype(encoder_outputs.dtype).itemsize
    vmem_bytes = _vmem_capacity_bytes()
    if block_b is None:
        block_b = _choose_block_b(B, L, H, itemsize, vmem_bytes)
    grid = (pl.cdiv(B, block_b),)

    # Double-buffered encoder block (H lane-padded) + slack for v/out/runtime.
    enc_block_bytes = 2 * block_b * L * _round_up(H, 128) * itemsize
    vmem_limit = int(min(max(enc_block_bytes + (8 << 20), 32 << 20),
                         vmem_bytes - (4 << 20)))

    out = pl.pallas_call(
        _attn_general_kernel,
        out_shape=jax.ShapeDtypeStruct((B, L), jnp.float32),
        grid_spec=pltpu.PrefetchScalarGridSpec(
            num_scalar_prefetch=0,
            grid=grid,
            in_specs=[
                pl.BlockSpec((block_b, H), lambda b: (b, 0)),        # v block
                pl.BlockSpec((L, block_b, H), lambda b: (0, b, 0)),  # enc, native layout
            ],
            out_specs=pl.BlockSpec((block_b, L), lambda b: (b, 0)),
        ),
        compiler_params=pltpu.CompilerParams(
            dimension_semantics=("parallel",),   # batch blocks are independent
            vmem_limit_bytes=vmem_limit,
        ),
    )(v, encoder_outputs)

    # unsqueeze(1): (B, L) -> (B, 1, L). Partial final batch blocks are handled by
    # Pallas's masked stores, so no output slicing / batch padding is needed.
    return out[:, None, :]


def attn_general_ref(hidden, encoder_outputs, weight, bias):
    """Plain-JAX reference reproducing the PyTorch forward for method='general'."""
    energy = jnp.einsum('lbh,kh->lbk', encoder_outputs, weight) + bias
    score = jnp.sum(hidden * energy, axis=2)          # (L, B)
    return jax.nn.softmax(score.T, axis=1)[:, None, :]


def _run_case(key, L, B, H, block_b=None):
    k_hid, k_enc, k_w, k_b = jax.random.split(key, 4)
    hidden = jax.random.normal(k_hid, (1, B, H), dtype=jnp.float32)
    encoder_outputs = jax.random.normal(k_enc, (L, B, H), dtype=jnp.float32)
    bound = 1.0 / np.sqrt(H)
    weight = jax.random.uniform(k_w, (H, H), jnp.float32, -bound, bound)
    bias = jax.random.uniform(k_b, (H,), jnp.float32, -bound, bound)

    out = jax.block_until_ready(
        attn_general(hidden, encoder_outputs, weight, bias, block_b=block_b))
    ref = attn_general_ref(hidden, encoder_outputs, weight, bias)

    assert out.shape == (B, 1, L), out.shape
    np.testing.assert_allclose(np.asarray(out), np.asarray(ref), rtol=1e-3, atol=1e-3)
    np.testing.assert_allclose(np.asarray(out).sum(-1), np.ones((B, 1)),
                               rtol=1e-4, atol=1e-4)


if __name__ == "__main__":
    key = jax.random.PRNGKey(0)
    k1, k2 = jax.random.split(key)

    # Small shapes consistent with the module: seq L=8, batch B=2, hidden H=32.
    _run_case(k1, L=8, B=2, H=32)

    # Multi-step grid: B=20 -> block_b=16 -> 2 grid steps with a partial last block.
    _run_case(k2, L=16, B=20, H=64)

    print("KERNEL_OK")
</pallas_src>

<mosaic_0001>
module attributes {stable_mosaic.version = 11 : i64} {
  func.func @_attn_general_kernel(%arg0: i32, %arg1: memref<8x32xf32, #tpu.memory_space<vmem>>, %arg2: memref<8x8x32xf32, #tpu.memory_space<vmem>>, %arg3: memref<8x8xf32, #tpu.memory_space<vmem>>) attributes {dimension_semantics = [#tpu.dimension_semantics<parallel>], iteration_bounds = array<i64: 1>, scalar_prefetch = 0 : i64, scratch_operands = 0 : i64, tpu.core_type = #tpu.core_type<tc>, window_params = [{transform_indices = @transform_0, window_bounds = array<i64: 8, 32>}, {transform_indices = @transform_1, window_bounds = array<i64: 8, 8, 32>}, {transform_indices = @transform_2, window_bounds = array<i64: 8, 8>}]} {
    %c0 = arith.constant 0 : index
    %c0_0 = arith.constant 0 : index
    %0 = vector.load %arg1[%c0, %c0_0] : memref<8x32xf32, #tpu.memory_space<vmem>>, vector<8x32xf32>
    %c0_1 = arith.constant 0 : index
    %c0_2 = arith.constant 0 : index
    %c0_3 = arith.constant 0 : index
    %1 = vector.load %arg2[%c0_1, %c0_2, %c0_3] : memref<8x8x32xf32, #tpu.memory_space<vmem>>, vector<8x8x32xf32>
    %2 = vector.shape_cast %0 : vector<8x32xf32> to vector<1x8x32xf32>
    %3 = vector.broadcast %2 : vector<1x8x32xf32> to vector<8x8x32xf32>
    %4 = arith.mulf %1, %3 : vector<8x8x32xf32>
    %cst = arith.constant dense<0.000000e+00> : vector<8x8xf32>
    %5 = vector.multi_reduction <add>, %4, %cst [2] : vector<8x8x32xf32> to vector<8x8xf32>
    %6 = tpu.transpose %5, [1, 0] : vector<8x8xf32> -> vector<8x8xf32>
    %cst_4 = arith.constant dense<0xFF800000> : vector<8xf32>
    %7 = vector.multi_reduction <maximumf>, %6, %cst_4 [1] : vector<8x8xf32> to vector<8xf32>
    %8 = vector.shape_cast %7 : vector<8xf32> to vector<8x1xf32>
    %9 = vector.broadcast %8 : vector<8x1xf32> to vector<8x8xf32>
    %10 = arith.subf %6, %9 : vector<8x8xf32>
    %11 = math.exp %10 : vector<8x8xf32>
    %cst_5 = arith.constant dense<0.000000e+00> : vector<8xf32>
    %12 = vector.multi_reduction <add>, %11, %cst_5 [1] : vector<8x8xf32> to vector<8xf32>
    %13 = vector.shape_cast %12 : vector<8xf32> to vector<8x1xf32>
    %14 = vector.broadcast %13 : vector<8x1xf32> to vector<8x8xf32>
    %15 = arith.divf %11, %14 : vector<8x8xf32>
    %c0_6 = arith.constant 0 : index
    %c0_7 = arith.constant 0 : index
    %16 = vector.load %arg3[%c0_6, %c0_7] : memref<8x8xf32, #tpu.memory_space<vmem>>, vector<8x8xf32>
    tpu.vector_store %arg3[%c0_6, %c0_7], %15 {strides = array<i32>} : memref<8x8xf32, #tpu.memory_space<vmem>>, vector<8x8xf32>,
    return
  }
  func.func @transform_0(%arg0: i32) -> (i32, i32) {
    %c0_i32 = arith.constant 0 : i32
    %c0_i32_0 = arith.constant 0 : i32
    return %arg0, %c0_i32 : i32, i32
  }
  func.func @transform_1(%arg0: i32) -> (i32, i32, i32) {
    %c0_i32 = arith.constant 0 : i32
    %c0_i32_0 = arith.constant 0 : i32
    %c0_i32_1 = arith.constant 0 : i32
    return %c0_i32, %arg0, %c0_i32_0 : i32, i32, i32
  }
  func.func @transform_2(%arg0: i32) -> (i32, i32) {
    %c0_i32 = arith.constant 0 : i32
    %c0_i32_0 = arith.constant 0 : i32
    return %arg0, %c0_i32 : i32, i32
  }
}

</mosaic_0001>

<bundles_post_ra>
// kernel: tpu_custom_call.1
= control target key start
LH: loop header
LB: loop body
LE: loop exit
PB: predicated region body
PF: predicated region fallthrough
CT: control target
= control target key end

     0   :  { %7 = vsyncpa [#allocation3], 0  ;;  %s346_s0 = inlined_call_operand.hbm [shape: f32[2,32], index: 0, kind: input, shape index: {}]   ;;  %s347_s1 = inlined_call_operand.hbm [shape: f32[8,2,32], index: 1, kind: input, shape index: {}]   ;;  %s348_s2 = inlined_call_operand.hbm [shape: f32[2,8], index: 2, kind: output, shape index: {}]  }
   0x1   :  { %8 = vsyncpa [#allocation6], 0 }
   0x2   :  { %9 = vsyncpa [#allocation4], 0 }
   0x3   :  { %13 = vsyncadd [#allocation3], 96  ;;  %s14_s11 = sshll.u32 %s346_s0, 4  ;;  %s294_s12 = smov [#allocation2]   ;;  %s15_s11 = int_to_ptr.hbm [resolvable:$true] %s14_s11 }
   0x4   :  { %s16_s13 = sshll.u32 %s294_s12, 4  ;;  %s295_s14 = smov 32   ;;  %s17_s13 = int_to_ptr.vmem [resolvable:$true] %s16_s13 }
   0x5   :  { %s296_s15 = smov 2  }
   0x6   :  { %22 = dma.hbm_to_vmem [thread:$0]  %s15_s11, 32, %s17_s13, [#allocation3], %s295_s14, %s295_s14, %s296_s15  }
   0x7   :  { %26 = vsyncadd [#allocation6], 768  ;;  %s31_s16 = sld [smem:[#allocation0]]   ;;  %s39_s19 = sshll.u32 %s347_s1, 4  ;;  %s40_s19 = int_to_ptr.hbm [resolvable:$true] %s39_s19 }
   0x8   :  { %s297_s20 = smov [#allocation5]   ;;  %s298_s0 = smov 32  }
   0x9   :  { %s41_s21 = sshll.u32 %s297_s20, 4  ;;  %48 = sst [smem:[#allocation9]] %s298_s0  ;;  %s42_s21 = int_to_ptr.vmem [resolvable:$true] %s41_s21 }
   0xa   :  { %s299_s22 = smov 128   ;;  %s300_s24 = smov 1  }
   0xb   :  { %50 = sst [smem:[#allocation9 + $0x1]] %s299_s22  ;;  %s301_s26 = smov 2  }
   0xc   :  { %52 = sst [smem:[#allocation9 + $0x2]] %s300_s24  ;;  %s302_s27 = smov [#allocation6]  }
   0xd   :  { %s222_s23 = sshll.u32 %s31_s16, 26  ;;  %54 = sst [smem:[#allocation9 + $0x3]] %s298_s0 }
   0xe   :  { %s223_s25 = sadd.s32 134217728, %s222_s23  ;;  %56 = sst [smem:[#allocation9 + $0x4]] %s298_s0 }
   0xf   :  { %58 = sst [smem:[#allocation9 + $0x5]] %s301_s26  ;;  %s303_s28 = smov [#allocation8]  }
  0x10   :  { %60 = dma.general %s40_s19, 256, %s42_s21, %s302_s27, %s303_s28, [#allocation9], %s223_s25, 0  }
  0x11   :  { %288 = dma.done.wait [#allocation3], 128  }
  0x12   :  { %289 = vsyncadd [#allocation3], 4294967168 }
  0x13   :  { %290 = dma.done.wait [#allocation6], 1024  }
  0x14   :  { %291 = vsyncadd [#allocation6], 4294966272  ;;  %v69_v0 = vld [vmem:[#allocation2] sm:$0xff]  ;;  %v70_v1 = vld [vmem:[#allocation5] sm:$0xff]  ;;  %vm86_vm0 = vcmask 261120   ;;  %v119_v27 = vlaneseq  ;;  %vm129_vm1 = vcmask 1041409  }
  0x15   :  { %v72_v2 = vld [vmem:[#allocation5 + $0x10] sm:$0xff]  ;;  %v78_v3 = vmul.f32 %v70_v1, %v69_v0  ;;  %v74_v5 = vld [vmem:[#allocation5 + $0x20] sm:$0xff]  ;;  %v71_v7 = vld [vmem:[#allocation5 + $0x8] sm:$0xff]  ;;  %vm131_vm2 = vcmask 1042434   ;;  %vm133_vm3 = vcmask 1043459   ;;  %vm135_vm4 = vcmask 1044484  }
  0x16   :  { %v80_v4 = vmul.f32 %v72_v2, %v69_v0  ;;  %v82_v6 = vmul.f32 %v74_v5, %v69_v0  ;;  %v73_v8 = vld [vmem:[#allocation5 + $0x18] sm:$0xff]  ;;  %v75_v11 = vld [vmem:[#allocation5 + $0x28] sm:$0xff]  ;;  %v79_v13 = vmul.f32 %v71_v7, %v69_v0  ;;  %v76_v19 = vld [vmem:[#allocation5 + $0x30] sm:$0xff]  ;;  %v120_v29 = vand.u32 127, %v119_v27 }
  0x17   :  { %v87_v9 = vsel %vm86_vm0, %v78_v3, 0.0  ;;  %v81_v14 = vmul.f32 %v73_v8, %v69_v0  ;;  %v83_v15 = vmul.f32 %v75_v11, %v69_v0  ;;  %v77_v20 = vld [vmem:[#allocation5 + $0x38] sm:$0xff]  ;;  %v84_v21 = vmul.f32 %v76_v19, %v69_v0 }
  0x18   :  { %v93_v10 = vsel %vm86_vm0, %v80_v4, 0.0  ;;  %88 = vadd.xlane.f32.xlu0 %v87_v9  ;;  %v99_v12 = vsel %vm86_vm0, %v82_v6, 0.0  ;;  %v90_v16 = vsel %vm86_vm0, %v79_v13, 0.0  ;;  %v85_v22 = vmul.f32 %v77_v20, %v69_v0 }
  0x19   :  { %94 = vadd.xlane.f32.xlu1 %v93_v10  ;;  %100 = vadd.xlane.f32.xlu2 %v99_v12  ;;  %v96_v17 = vsel %vm86_vm0, %v81_v14, 0.0  ;;  %v102_v18 = vsel %vm86_vm0, %v83_v15, 0.0  ;;  %v105_v23 = vsel %vm86_vm0, %v84_v21, 0.0  ;;  %vm137_vm5 = vcmask 1045509  }
  0x1a   :  { %v108_v24 = vsel %vm86_vm0, %v85_v22, 0.0  ;;  %vm139_vm6 = vcmask 1046534   ;;  %vm141_vm7 = vcmask 1047559   ;;  %vm176_vm8 = vcmask 64512  }
  0x20   :  { %91 = vadd.xlane.f32.xlu0 %v90_v16 }
  0x21   :  { %97 = vadd.xlane.f32.xlu1 %v96_v17  ;;  %103 = vadd.xlane.f32.xlu2 %v102_v18 }
  0x28   :  { %106 = vadd.xlane.f32.xlu0 %v105_v23 }
  0x29   :  { %109 = vadd.xlane.f32.xlu1 %v108_v24 }
  0x8b   :  { %v89_v25 = vpop.xlane.xlu0 %88 }
  0x8c   :  { %v95_v26 = vpop.xlane.xlu1 %94  ;;  %v101_v28 = vpop.xlane.xlu2 %100  ;;  %v121_v32 = vperm.slane %v89_v25, %v120_v29 }
  0x8d   :  { %v123_v35 = vperm.slane %v95_v26, %v120_v29  ;;  %v125_v39 = vperm.slane %v101_v28, %v120_v29 }
  0x93   :  { %v92_v30 = vpop.xlane.xlu0 %91 }
  0x94   :  { %v98_v31 = vpop.xlane.xlu1 %97  ;;  %v122_v33 = vperm.slane %v92_v30, %v120_v29  ;;  %v104_v37 = vpop.xlane.xlu2 %103 }
  0x95   :  { %v124_v34 = vperm.slane %v98_v31, %v120_v29  ;;  %v126_v41 = vperm.slane %v104_v37, %v120_v29 }
  0x96   :  { %v130_v36 = vsel %vm129_vm1, %v122_v33, %v121_v32 }
  0x97   :  { %v132_v38 = vsel %vm131_vm2, %v123_v35, %v130_v36 }
  0x98   :  { %v134_v40 = vsel %vm133_vm3, %v124_v34, %v132_v38 }
  0x99   :  { %v136_v42 = vsel %vm135_vm4, %v125_v39, %v134_v40 }
  0x9a   :  { %v138_v47 = vsel %vm137_vm5, %v126_v41, %v136_v42 }
  0x9b   :  { %v107_v43 = vpop.xlane.xlu0 %106 }
  0x9c   :  { %v110_v44 = vpop.xlane.xlu1 %109  ;;  %v127_v45 = vperm.slane %v107_v43, %v120_v29 }
  0x9d   :  { %v128_v46 = vperm.slane %v110_v44, %v120_v29 }
  0x9e   :  { %v140_v48 = vsel %vm139_vm6, %v127_v45, %v138_v47 }
  0x9f   :  { %v142_v49 = vsel %vm141_vm7, %v128_v46, %v140_v48 }
  0xa0   :  { %144 = vxpose.xlu2.b32.start.end [1/1] (short) (narrow) %v142_v49, 8 }
 0x139   :  { %v160_v50 = vpop.trf.xlu2 }
 0x13a   :  { %v177_v51 = vsel %vm176_vm8, %v160_v50, -inf }
 0x13b   :  { %178 = vmax.xlane.f32.xlu0 %v177_v51 }
 0x1ae   :  { %v179_v52 = vpop.xlane.xlu0 %178 }
 0x1af   :  { %v180_v53 = vsub.f32 %v160_v50, %v179_v52 }
 0x1b1   :  { %v181_v54 = vmul.f32 1.442695, %v180_v53 }
 0x1b3   :  { %236 = vpow2.f32 %v181_v54 }
 0x1b9   :  { %v237_v55 = vpop.eup %236 }
 0x1ba   :  { %v183_v56 = vsel %vm176_vm8, %v237_v55, 0.0 }
 0x1bb   :  { %184 = vadd.xlane.f32.xlu1 %v183_v56 }
 0x22e   :  { %v185_v57 = vpop.xlane.xlu1 %184 }
 0x22f   :  { %238 = vrcp.f32 %v185_v57  ;;  %v197_v61 = vand.u32 2147483648, %v185_v57  ;;  %v195_v63 = vand.u32 2147483647, %v185_v57  ;;  %vm191_vm10 = vweird.f32 %v185_v57 }
 0x231   :  { %v198_v1 = vor.u32 1.1754944e-38, %v197_v61  ;;  %vm196_vm12 = vcmp.eq.f32.partialorder %v195_v63, 8.507059e+37 }
 0x235   :  { %v239_v58 = vpop.eup %238 }
 0x236   :  { %v187_v59 = vmul.f32 %v239_v58, %v185_v57  ;;  %vm192_vm9 = vweird.f32 %v239_v58 }
 0x237   :  { %vm193_vm11 = vmor %vm191_vm10, %vm192_vm9 }
 0x238   :  { %v188_v60 = vsub.f32 1.0, %v187_v59 }
 0x23a   :  { %v189_v62 = vmul.f32 %v239_v58, %v188_v60 }
 0x23c   :  { %v190_v0 = vadd.f32 %v239_v58, %v189_v62 }
 0x23e   :  { %v194_v2 = vsel %vm193_vm11, %v239_v58, %v190_v0 }
 0x23f   :  { %v199_v3 = vsel %vm196_vm12, %v198_v1, %v194_v2 }
 0x240   :  { %v200_v4 = vmul.f32 %v237_v55, %v199_v3 }
 0x242   :  { %201 = vst.msk [vmem:[#allocation7] sm:$0xff] %vm176_vm8, %v200_v4 }
 0x243   :  { %205 = vsyncadd [#allocation4], 96  ;;  %s208_s30 = sshll.u32 %s348_s2, 4  ;;  %s304_s3 = smov [#allocation7]   ;;  %s209_s30 = int_to_ptr.hbm [resolvable:$true] %s208_s30 }
 0x244   :  { %s206_s4 = sshll.u32 %s304_s3, 4  ;;  %s207_s4 = int_to_ptr.vmem [resolvable:$true] %s206_s4 }
 0x245   :  { %214 = dma.vmem_to_hbm [thread:$0]  %s207_s4, 32, %s209_s30, [#allocation4], %s295_s14, %s295_s14, %s296_s15  }
 0x246   :  { %292 = dma.done.wait [#allocation4], 128  }
 0x247   :  { %293 = vsyncadd [#allocation4], 4294967168 }
 0x248   :  { %219 = vsyncpa [#allocation3], 1 }
 0x249   :  { %220 = vsyncpa [#allocation6], 1 }
 0x24a   :  { %221 = vsyncpa [#allocation4], 1 }

</bundles_post_ra>
